<compile_context>
chip_gen: v7x
topology: tpu7x:2x2x1
jax: 0.10.0
libtpu: 0.0.40
codegen_flags: <defaults>
</compile_context>

<pallas_src>
import functools
import math

import numpy as np

import jax
import jax.numpy as jnp
from jax.experimental import pallas as pl
from jax.experimental.pallas import tpu as pltpu


# ----------------------------- small helpers -----------------------------

def _round_up(x, m):
    return ((x + m - 1) // m) * m


@functools.lru_cache(maxsize=None)
def _vmem_limit():
    """Generation-aware scoped-VMEM budget: ~48 MB on v7x (64 MiB physical),
    up to 96 MB on v5e/v6e (128 MiB physical)."""
    cap = 128 * 1024 * 1024
    try:
        cap = int(getattr(pltpu.get_tpu_info(), "vmem_capacity_bytes", cap))
    except Exception:
        pass
    return int(min(cap * 3 // 4, 96 * 1024 * 1024))


def _wspec(w):
    """Grid-invariant (constant block index) operand: single-buffered, since
    double-buffering a block that never changes only wastes VMEM."""
    nd = w.ndim
    return pl.BlockSpec(w.shape, lambda *_: (0,) * nd, pipeline_mode=pl.Buffered(1))


# ----------------------------- in-kernel helpers -----------------------------

def _ln(x, g, b, eps=1e-5):
    mu = jnp.mean(x, axis=-1, keepdims=True)
    var = jnp.mean(jnp.square(x - mu), axis=-1, keepdims=True)
    return (x - mu) * jax.lax.rsqrt(var + eps) * g + b


def _gelu(y):
    # tanh-approximate GELU (see TODO in module docstring).
    return 0.5 * y * (1.0 + jnp.tanh(0.7978845608028654 * (y + 0.044715 * y * y * y)))


def _mha_into(ctx_sc, q, k, v, bias, heads, scale):
    """Multi-head attention; each head's PV result is stored directly into its
    lane slice of the VMEM scratch `ctx_sc` (no concatenate, no f32 partial
    pressure).  `bias` broadcasts to (rows_q, rows_k)."""
    H = q.shape[-1]
    d = H // heads
    for h in range(heads):                               # static unroll over heads
        sl = slice(h * d, (h + 1) * d)
        s = jax.lax.dot_general(
            q[:, sl].astype(jnp.bfloat16), k[:, sl].astype(jnp.bfloat16),
            (((1,), (1,)), ((), ())), preferred_element_type=jnp.float32) * scale
        s = s + bias
        s = s - jnp.max(s, axis=-1, keepdims=True)
        p = jnp.exp(s)
        p = p * pl.reciprocal(jnp.sum(p, axis=-1, keepdims=True), approx=True)
        ctx_sc[:, sl] = jnp.dot(p.astype(jnp.bfloat16), v[:, sl].astype(jnp.bfloat16),
                                preferred_element_type=jnp.float32)


# ----------------------------- embeddings + LayerNorm -----------------------------

def _emb_ln_kernel(eps, w_ref, p_ref, t_ref, g_ref, b_ref, o_ref):
    x = w_ref[...] + p_ref[...] + t_ref[...]              # fused word+pos+type add
    o_ref[...] = _ln(x, g_ref[...], b_ref[...], eps).astype(o_ref.dtype)


def emb_layernorm(word_e, pos_e, type_e, g, b, eps=1e-5):
    """word_e/pos_e: (R, H) f32, type_e/g/b: (1, H).  Returns (R, H) bf16."""
    R, H = word_e.shape
    TR = min(512, _round_up(R, 8))                         # large row tiles: mem-bound op
    Rp = _round_up(R, TR)
    if Rp != R:
        word_e = jnp.pad(word_e, ((0, Rp - R), (0, 0)))
        pos_e = jnp.pad(pos_e, ((0, Rp - R), (0, 0)))
    out = pl.pallas_call(
        functools.partial(_emb_ln_kernel, eps),
        grid=(Rp // TR,),
        in_specs=[pl.BlockSpec((TR, H), lambda i: (i, 0)),
                  pl.BlockSpec((TR, H), lambda i: (i, 0)),
                  _wspec(type_e), _wspec(g), _wspec(b)],
        out_specs=pl.BlockSpec((TR, H), lambda i: (i, 0)),
        out_shape=jax.ShapeDtypeStruct((Rp, H), jnp.bfloat16),
        compiler_params=pltpu.CompilerParams(
            dimension_semantics=("parallel",), vmem_limit_bytes=_vmem_limit()),
    )(word_e, pos_e, type_e, g, b)
    return out[:R]


# ----------------------------- fused transformer layer -----------------------------

def _encoder_layer_kernel(heads, scale,
                          x_ref, m_ref,
                          wq, bq, wk, bk, wv, bv, wo, bo,
                          ln1g, ln1b, wi1, bi1, wi2, bi2, ln2g, ln2b,
                          o_ref, ctx_sc):
    """One fully-fused transformer layer for a single batch element (bf16 I/O)."""
    xb = x_ref[0].astype(jnp.bfloat16)                     # (S, H)
    xf = x_ref[0].astype(jnp.float32)
    q = jnp.dot(xb, wq[...], preferred_element_type=jnp.float32) + bq[...]
    k = jnp.dot(xb, wk[...], preferred_element_type=jnp.float32) + bk[...]
    v = jnp.dot(xb, wv[...], preferred_element_type=jnp.float32) + bv[...]
    _mha_into(ctx_sc, q, k, v, m_ref[0], heads, scale)     # (S, H) written in slices
    attn = jnp.dot(ctx_sc[...].astype(jnp.bfloat16), wo[...],
                   preferred_element_type=jnp.float32) + bo[...]
    x1 = _ln(xf + attn, ln1g[...], ln1b[...])              # fused residual + LayerNorm
    hmid = _gelu(jnp.dot(x1.astype(jnp.bfloat16), wi1[...],
                         preferred_element_type=jnp.float32) + bi1[...])
    ff = jnp.dot(hmid.astype(jnp.bfloat16), wi2[...],
                 preferred_element_type=jnp.float32) + bi2[...]
    o_ref[0] = _ln(x1 + ff, ln2g[...], ln2b[...]).astype(o_ref.dtype)


def encoder_layer(x, mbias, lp, heads, scale):
    # TODO(synk): at real RoBERTa sizes tile S, inter and the attention Sk
    # reduction instead of whole-(S,H)/(S,inter) blocks (esp. for v7x VMEM).
    B, S, H = x.shape
    weights = (lp["wq"], lp["bq"], lp["wk"], lp["bk"], lp["wv"], lp["bv"],
               lp["wo"], lp["bo"], lp["ln1_g"], lp["ln1_b"],
               lp["w1"], lp["b1"], lp["w2"], lp["b2"], lp["ln2_g"], lp["ln2_b"])
    in_specs = ([pl.BlockSpec((1, S, H), lambda b: (b, 0, 0)),
                 pl.BlockSpec((1, 1, S), lambda b: (b, 0, 0))]
                + [_wspec(w) for w in weights])
    return pl.pallas_call(
        functools.partial(_encoder_layer_kernel, heads, scale),
        grid=(B,),
        in_specs=in_specs,
        out_specs=pl.BlockSpec((1, S, H), lambda b: (b, 0, 0)),
        out_shape=jax.ShapeDtypeStruct((B, S, H), jnp.bfloat16),   # bf16 inter-layer I/O
        scratch_shapes=[pltpu.VMEM((S, H), jnp.float32)],
        compiler_params=pltpu.CompilerParams(
            dimension_semantics=("parallel",), vmem_limit_bytes=_vmem_limit()),
    )(x, mbias, *weights)


# ----------------------------- group-batched BiLSTM pooling -----------------------------

def _bilstm_kernel(smax, Hc, GB,
                   x_ref, len_ref,
                   wih0f, whh0f, b0f, wih0b, whh0b, b0b,
                   wih1f, whh1f, b1f, wih1b, whh1b, b1b,
                   o_ref, xg_sc, sf_sc, sb_sc):
    """2-layer bidirectional LSTM pooling of GB padded groups per grid step.
    PyTorch gate order (i, f, g, o); padded timesteps freeze the state."""
    unroll = True if smax <= 16 else 4
    lens = len_ref[...]                                    # (GB, 1) int32
    x2d = x_ref[...].reshape(smax * GB, x_ref.shape[-1]).astype(jnp.bfloat16)

    def recur(whh_ref, reverse, out_sc):
        whh = whh_ref[...]

        def step(s, carry):
            h, c = carry                                   # (GB, Hc) f32
            t = (smax - 1 - s) if reverse else s
            gates = xg_sc[t] + jnp.dot(h.astype(jnp.bfloat16), whh,
                                       preferred_element_type=jnp.float32)
            i = jax.nn.sigmoid(gates[:, 0:Hc])
            f = jax.nn.sigmoid(gates[:, Hc:2 * Hc])
            gg = jnp.tanh(gates[:, 2 * Hc:3 * Hc])
            o = jax.nn.sigmoid(gates[:, 3 * Hc:4 * Hc])
            c_new = f * c + i * gg
            h_new = o * jnp.tanh(c_new)
            m = (t < lens).astype(jnp.float32)             # freeze state on padded steps
            h = h + m * (h_new - h)
            c = c + m * (c_new - c)
            if out_sc is not None:
                out_sc[t] = h
            return (h, c)

        init = (jnp.zeros((GB, Hc), jnp.float32), jnp.zeros((GB, Hc), jnp.float32))
        hT, _ = jax.lax.fori_loop(0, smax, step, init, unroll=unroll)
        return hT

    # ---- layer 1 (input = token embeddings); hoisted sequence-wide input proj ----
    xg_sc[...] = (jnp.dot(x2d, wih0f[...], preferred_element_type=jnp.float32)
                  + b0f[...]).reshape(smax, GB, 4 * Hc)
    recur(whh0f, False, sf_sc)                             # layer-1 forward outputs
    xg_sc[...] = (jnp.dot(x2d, wih0b[...], preferred_element_type=jnp.float32)
                  + b0b[...]).reshape(smax, GB, 4 * Hc)
    recur(whh0b, True, sb_sc)                              # layer-1 backward outputs

    # ---- layer 2 (input = [fwd, bwd]); concat eliminated by splitting W_ih rows ----
    sf2d = sf_sc[...].reshape(smax * GB, Hc).astype(jnp.bfloat16)
    sb2d = sb_sc[...].reshape(smax * GB, Hc).astype(jnp.bfloat16)
    for wih, b, whh, rev, dst in ((wih1f, b1f, whh1f, False, slice(0, Hc)),
                                  (wih1b, b1b, whh1b, True, slice(Hc, 2 * Hc))):
        xg_sc[...] = (jnp.dot(sf2d, wih[0:Hc, :], preferred_element_type=jnp.float32)
                      + jnp.dot(sb2d, wih[Hc:2 * Hc, :],
                                preferred_element_type=jnp.float32)
                      + b[...]).reshape(smax, GB, 4 * Hc)
        o_ref[:, dst] = recur(whh, rev, None)              # cat(h_n[-2], h_n[-1])


def bilstm_pool_batched(x, lengths, lstm_params, GB=8):
    """x: (G, S_max, H) padded groups (bf16), lengths: (G,) int32. Returns (G, H) f32."""
    G, smax, H = x.shape
    Hc = H // 2
    Gp = _round_up(G, GB)
    lengths = jnp.asarray(lengths, jnp.int32)
    if Gp != G:
        x = jnp.pad(x, ((0, Gp - G), (0, 0), (0, 0)))
        lengths = jnp.pad(lengths, (0, Gp - G))
    xt = jnp.transpose(x, (1, 0, 2))                       # time-major (smax, Gp, H)
    lens2 = lengths.reshape(Gp, 1)
    (l0f, l0b), (l1f, l1b) = lstm_params
    weights = (l0f["wih"], l0f["whh"], l0f["b"], l0b["wih"], l0b["whh"], l0b["b"],
               l1f["wih"], l1f["whh"], l1f["b"], l1b["wih"], l1b["whh"], l1b["b"])
    out = pl.pallas_call(
        functools.partial(_bilstm_kernel, smax, Hc, GB),
        grid=(Gp // GB,),
        in_specs=[pl.BlockSpec((smax, GB, H), lambda g: (0, g, 0)),
                  pl.BlockSpec((GB, 1), lambda g: (g, 0))]
                 + [_wspec(w) for w in weights],
        out_specs=pl.BlockSpec((GB, H), lambda g: (g, 0)),
        out_shape=jax.ShapeDtypeStruct((Gp, H), jnp.float32),
        scratch_shapes=[pltpu.VMEM((smax, GB, 4 * Hc), jnp.float32),
                        pltpu.VMEM((smax, GB, Hc), jnp.float32),
                        pltpu.VMEM((smax, GB, Hc), jnp.float32)],
        compiler_params=pltpu.CompilerParams(
            dimension_semantics=("parallel",), vmem_limit_bytes=_vmem_limit()),
    )(xt, lens2, *weights)
    return out[:G]


# ----------------------------- batched cross-attention -----------------------------

def _xattn_kernel(heads, scale, t_ref, c_ref, m_ref,
                  wq, bq, wk, bk, wv, bv, wo, bo, o_ref, ctx_sc):
    """Fused cross-attention for one batch element: q/k/v proj, masked MHA over
    all columns, out proj, residual, L2 normalize."""
    tb = t_ref[0]                                          # (Tmax, H) f32
    tbb = tb.astype(jnp.bfloat16)
    cbb = c_ref[0].astype(jnp.bfloat16)                    # (Cmax, H)
    q = jnp.dot(tbb, wq[...], preferred_element_type=jnp.float32) + bq[...]
    k = jnp.dot(cbb, wk[...], preferred_element_type=jnp.float32) + bk[...]
    v = jnp.dot(cbb, wv[...], preferred_element_type=jnp.float32) + bv[...]
    _mha_into(ctx_sc, q, k, v, m_ref[0], heads, scale)
    upd = jnp.dot(ctx_sc[...].astype(jnp.bfloat16), wo[...],
                  preferred_element_type=jnp.float32) + bo[...]
    y = tb + upd
    inv = jax.lax.rsqrt(jnp.maximum(jnp.sum(y * y, axis=-1, keepdims=True), 1e-24))
    o_ref[0] = y * inv                                     # F.normalize(p=2, dim=1)


def cross_attention_update(table_embs, tbl_counts, col_embs, col_group_counts,
                           col_counts, xp, heads):
    """ONE batched kernel (grid over batch, parallel): tables/columns padded to
    batch maxima; per-table column membership expressed as a -1e9 bias."""
    H = table_embs.shape[-1]
    B = len(tbl_counts)
    scale = 1.0 / math.sqrt(H // heads)
    Tmax = _round_up(max(tbl_counts), 8)
    Cmax = _round_up(max(col_group_counts), 8)
    tb = _stack_groups(table_embs, tbl_counts, Tmax)       # (B, Tmax, H) f32
    cb = _stack_groups(col_embs, col_group_counts, Cmax)   # (B, Cmax, H) f32
    bias = np.full((B, Tmax, Cmax), -1e9, np.float32)
    for b in range(B):
        start = 0
        for t, cnt in enumerate(col_counts[b]):
            bias[b, t, start:start + cnt] = 0.0
            start += cnt
    bias = jnp.asarray(bias)
    weights = (xp["wq"], xp["bq"], xp["wk"], xp["bk"],
               xp["wv"], xp["bv"], xp["wo"], xp["bo"])
    out = pl.pallas_call(
        functools.partial(_xattn_kernel, heads, scale),
        grid=(B,),
        in_specs=[pl.BlockSpec((1, Tmax, H), lambda b: (b, 0, 0)),
                  pl.BlockSpec((1, Cmax, H), lambda b: (b, 0, 0)),
                  pl.BlockSpec((1, Tmax, Cmax), lambda b: (b, 0, 0))]
                 + [_wspec(w) for w in weights],
        out_specs=pl.BlockSpec((1, Tmax, H), lambda b: (b, 0, 0)),
        out_shape=jax.ShapeDtypeStruct((B, Tmax, H), jnp.float32),
        scratch_shapes=[pltpu.VMEM((Tmax, H), jnp.float32)],
        compiler_params=pltpu.CompilerParams(
            dimension_semantics=("parallel",), vmem_limit_bytes=_vmem_limit()),
    )(tb, cb, bias, *weights)
    return _unstack_rows(out, tbl_counts)


# ----------------------------- MLP classification heads -----------------------------

def _mlp_head_kernel(x_ref, w1, b1, w2, b2, o_ref):
    h = jnp.dot(x_ref[...].astype(jnp.bfloat16), w1[...],
                preferred_element_type=jnp.float32) + b1[...]
    h = jnp.where(h >= 0.0, h, 0.01 * h)                   # LeakyReLU; Dropout = identity
    o_ref[...] = jnp.dot(h.astype(jnp.bfloat16), w2[...],
                         preferred_element_type=jnp.float32) + b2[...]


def mlp_head(x, mp):
    """Runs once over ALL rows; output padded to 128 lanes (lane-dense stores)
    and sliced back to 2 logits in the wrapper."""
    M, H = x.shape
    w2 = jnp.pad(mp["w2"], ((0, 0), (0, 128 - mp["w2"].shape[1])))
    b2 = jnp.pad(mp["b2"], ((0, 0), (0, 128 - mp["b2"].shape[1])))
    args = (x, mp["w1"], mp["b1"], w2, b2)
    out = pl.pallas_call(
        _mlp_head_kernel,
        grid=(1,),
        in_specs=[pl.BlockSpec(x.shape, lambda i: (0, 0))]
                 + [_wspec(w) for w in args[1:]],
        out_specs=pl.BlockSpec((M, 128), lambda i: (0, 0)),
        out_shape=jax.ShapeDtypeStruct((M, 128), jnp.float32),
        compiler_params=pltpu.CompilerParams(
            dimension_semantics=("arbitrary",), vmem_limit_bytes=_vmem_limit()),
    )(*args)
    return out[:, :2]


# ----------------------------- parameters -----------------------------

def _dense(key, shape, scale=0.02, dtype=jnp.bfloat16):
    return (scale * jax.random.normal(key, shape, jnp.float32)).astype(dtype)


def _lstm_params(keys, H, Hc):
    params = []
    for _layer in range(2):                 # num_layers = 2; layer-2 input = 2*Hc == H
        dirs = []
        for _d in range(2):                 # bidirectional
            dirs.append(dict(
                wih=_dense(next(keys), (H, 4 * Hc), 0.1),
                whh=_dense(next(keys), (Hc, 4 * Hc), 0.1),
                # single pre-summed bias ( = b_ih + b_hh of nn.LSTM )
                b=_dense(next(keys), (1, 4 * Hc), 0.1, jnp.float32),
            ))
        params.append(tuple(dirs))
    return params


def _mlp_params(keys, H):
    return dict(w1=_dense(next(keys), (H, 256), 0.05),
                b1=jnp.zeros((1, 256), jnp.float32),
                w2=_dense(next(keys), (256, 2), 0.05),
                b2=jnp.zeros((1, 2), jnp.float32))


def init_params(key, cfg):
    H = cfg["hidden"]
    Hc = H // 2
    keys = iter(jax.random.split(key, 256))
    p = {}
    p["word_emb"] = _dense(next(keys), (cfg["vocab"], H), dtype=jnp.float32)
    p["pos_emb"] = _dense(next(keys), (cfg["max_pos"], H), dtype=jnp.float32)
    p["type_emb"] = _dense(next(keys), (cfg["type_vocab"], H), dtype=jnp.float32)
    p["emb_ln_g"] = jnp.ones((1, H), jnp.float32)
    p["emb_ln_b"] = jnp.zeros((1, H), jnp.float32)
    p["layers"] = []
    for _ in range(cfg["layers"]):
        lp = {}
        for name in ("wq", "wk", "wv", "wo"):
            lp[name] = _dense(next(keys), (H, H))
            lp["b" + name[1]] = jnp.zeros((1, H), jnp.float32)
        lp["w1"] = _dense(next(keys), (H, cfg["inter"]))
        lp["b1"] = jnp.zeros((1, cfg["inter"]), jnp.float32)
        lp["w2"] = _dense(next(keys), (cfg["inter"], H))
        lp["b2"] = jnp.zeros((1, H), jnp.float32)
        lp["ln1_g"] = jnp.ones((1, H), jnp.float32)
        lp["ln1_b"] = jnp.zeros((1, H), jnp.float32)
        lp["ln2_g"] = jnp.ones((1, H), jnp.float32)
        lp["ln2_b"] = jnp.zeros((1, H), jnp.float32)
        p["layers"].append(lp)
    p["table_lstm"] = _lstm_params(keys, H, Hc)
    p["column_lstm"] = _lstm_params(keys, H, Hc)
    p["table_mlp"] = _mlp_params(keys, H)
    p["column_mlp"] = _mlp_params(keys, H)
    p["xattn"] = dict(
        wq=_dense(next(keys), (H, H)), bq=jnp.zeros((1, H), jnp.float32),
        wk=_dense(next(keys), (H, H)), bk=jnp.zeros((1, H), jnp.float32),
        wv=_dense(next(keys), (H, H)), bv=jnp.zeros((1, H), jnp.float32),
        wo=_dense(next(keys), (H, H)), bo=jnp.zeros((1, H), jnp.float32),
    )
    return p


# ----------------------------- host-side glue -----------------------------

def roberta_encode(params, cfg, input_ids, attention_mask):
    """RoBERTa-style encoder; returns last_hidden_state (B, S, H) bf16."""
    H, heads = cfg["hidden"], cfg["heads"]
    B, S = input_ids.shape
    scale = 1.0 / math.sqrt(H // heads)
    # TODO(synk): embedding-table gathers stay in plain JAX (no tiny-Pallas gather).
    mask = (input_ids != cfg["pad_id"]).astype(jnp.int32)
    pos_ids = jnp.cumsum(mask, axis=1) * mask + cfg["pad_id"]
    word_e = jnp.take(params["word_emb"], input_ids.reshape(-1), axis=0)   # (B*S, H)
    pos_e = jnp.take(params["pos_emb"], pos_ids.reshape(-1), axis=0)
    x = emb_layernorm(word_e, pos_e, params["type_emb"][0:1],
                      params["emb_ln_g"], params["emb_ln_b"])
    x = x.reshape(B, S, H)                                                  # bf16
    mbias = ((1.0 - attention_mask.astype(jnp.float32)) * -1e9)[:, None, :]  # (B,1,S)
    for lp in params["layers"]:
        x = encoder_layer(x, mbias, lp, heads, scale)       # one fused kernel / layer
    return x


def _gather_pad_groups(seq_embs, groups):
    """Vectorized ragged gather: ONE jnp.take over a host-built (G, smax) index
    matrix; padded positions reuse a real index and are masked out of the LSTM
    state by the per-group length vector."""
    # TODO(synk): the index matrix could alternatively ride in via scalar
    # prefetch and be gathered by manual DMA inside the BiLSTM kernel.
    B, S, H = seq_embs.shape
    lens, rows = [], []
    for b, per_b in enumerate(groups):
        for ids in per_b:
            lens.append(len(ids))
            rows.append((b, ids))
    G = len(lens)
    smax = _round_up(max(lens), 8)
    idx = np.zeros((G, smax), np.int64)
    for g, (b, ids) in enumerate(rows):
        idx[g, :len(ids)] = np.asarray(ids, np.int64) + b * S
        idx[g, len(ids):] = b * S
    flat = seq_embs.reshape(B * S, H)
    x = jnp.take(flat, jnp.asarray(idx.reshape(-1), jnp.int32), axis=0)
    x = x.reshape(G, smax, H)
    return x, jnp.asarray(lens, jnp.int32), [len(per_b) for per_b in groups]


def _stack_groups(flat, counts, pad_to):
    """(sum(counts), H) -> (B, pad_to, H), zero-padded, via one gather."""
    G, H = flat.shape
    B = len(counts)
    idx = np.full((B, pad_to), G, np.int32)                 # index G -> appended zero row
    start = 0
    for b, c in enumerate(counts):
        idx[b, :c] = np.arange(start, start + c)
        start += c
    flat_p = jnp.concatenate([flat, jnp.zeros((1, H), flat.dtype)], axis=0)
    return jnp.take(flat_p, jnp.asarray(idx.reshape(-1)), axis=0).reshape(B, pad_to, H)


def _unstack_rows(stacked, counts):
    B, P, H = stacked.shape
    idx = np.concatenate([np.arange(b * P, b * P + c) for b, c in enumerate(counts)])
    return jnp.take(stacked.reshape(B * P, H), jnp.asarray(idx, jnp.int32), axis=0)


def _split_rows(x, counts):
    out, start = [], 0
    for c in counts:
        out.append(x[start:start + c])
        start += c
    return out


def schema_item_classifier_forward(params, cfg, input_ids, attention_mask,
                                   col_token_ids, tbl_token_ids, col_counts):
    heads = cfg["heads"]
    seq_embs = roberta_encode(params, cfg, input_ids, attention_mask)

    # Pool every ragged table/column group of the whole batch with ONE BiLSTM
    # kernel launch per kind (GB groups per grid step, parallel over groups).
    tbl_x, tbl_lens, tbl_counts = _gather_pad_groups(seq_embs, tbl_token_ids)
    col_x, col_lens, col_group_counts = _gather_pad_groups(seq_embs, col_token_ids)
    tbl_embs_all = bilstm_pool_batched(tbl_x, tbl_lens, params["table_lstm"])
    col_embs_all = bilstm_pool_batched(col_x, col_lens, params["column_lstm"])

    # Batched cross-attention: one kernel over the whole batch.
    upd_tbl_all = cross_attention_update(tbl_embs_all, tbl_counts,
                                         col_embs_all, col_group_counts,
                                         col_counts, params["xattn"], heads)

    # MLP heads: ONE launch over all tables / all columns of the whole batch.
    tbl_logits_all = mlp_head(upd_tbl_all, params["table_mlp"])
    col_logits_all = mlp_head(col_embs_all, params["column_mlp"])

    return {"batch_table_name_cls_logits": _split_rows(tbl_logits_all, tbl_counts),
            "batch_column_info_cls_logits": _split_rows(col_logits_all,
                                                        col_group_counts)}


# ----------------------------- demo -----------------------------

if __name__ == "__main__":
    cfg = dict(vocab=128, hidden=128, heads=8, layers=2, inter=256,
               max_pos=64, pad_id=1, type_vocab=1)
    key = jax.random.PRNGKey(0)
    pkey, dkey = jax.random.split(key)
    params = init_params(pkey, cfg)

    B, S = 2, 16
    input_ids = jax.random.randint(dkey, (B, S), 2, cfg["vocab"], dtype=jnp.int32)
    attention_mask = jnp.ones((B, S), jnp.int32)
    # ragged schema bookkeeping (Python lists, as in the PyTorch module)
    tbl_token_ids = [[[1, 2, 3], [4, 5, 6]], [[0, 1, 2], [3, 4, 5]]]
    col_token_ids = [[[2, 3], [4, 5], [6, 7]], [[1, 2], [3, 4], [5, 6]]]
    col_counts = [[2, 1], [1, 2]]

    out = schema_item_classifier_forward(params, cfg, input_ids, attention_mask,
                                         col_token_ids, tbl_token_ids, col_counts)
    for t in out["batch_table_name_cls_logits"] + out["batch_column_info_cls_logits"]:
        jax.block_until_ready(t)
    assert out["batch_table_name_cls_logits"][0].shape == (2, 2)
    assert out["batch_column_info_cls_logits"][0].shape == (3, 2)
    print("KERNEL_OK")
</pallas_src>

<mosaic_0001>
module attributes {stable_mosaic.version = 11 : i64} {
  func.func @_emb_ln_kernel(%arg0: i32, %arg1: memref<32x128xf32, #tpu.memory_space<vmem>>, %arg2: memref<32x128xf32, #tpu.memory_space<vmem>>, %arg3: memref<1x128xf32, #tpu.memory_space<vmem>>, %arg4: memref<1x128xf32, #tpu.memory_space<vmem>>, %arg5: memref<1x128xf32, #tpu.memory_space<vmem>>, %arg6: memref<32x128xbf16, #tpu.memory_space<vmem>>) attributes {dimension_semantics = [#tpu.dimension_semantics<parallel>], iteration_bounds = array<i64: 1>, scalar_prefetch = 0 : i64, scratch_operands = 0 : i64, tpu.core_type = #tpu.core_type<tc>, window_params = [{transform_indices = @transform_0, window_bounds = array<i64: 32, 128>}, {transform_indices = @transform_1, window_bounds = array<i64: 32, 128>}, {pipeline_mode = #tpu.pipeline_mode<synchronous>, transform_indices = @transform_2, window_bounds = array<i64: 1, 128>}, {pipeline_mode = #tpu.pipeline_mode<synchronous>, transform_indices = @transform_3, window_bounds = array<i64: 1, 128>}, {pipeline_mode = #tpu.pipeline_mode<synchronous>, transform_indices = @transform_4, window_bounds = array<i64: 1, 128>}, {transform_indices = @transform_5, window_bounds = array<i64: 32, 128>}]} {
    %c0 = arith.constant 0 : index
    %c0_0 = arith.constant 0 : index
    %0 = vector.load %arg1[%c0, %c0_0] : memref<32x128xf32, #tpu.memory_space<vmem>>, vector<32x128xf32>
    %c0_1 = arith.constant 0 : index
    %c0_2 = arith.constant 0 : index
    %1 = vector.load %arg2[%c0_1, %c0_2] : memref<32x128xf32, #tpu.memory_space<vmem>>, vector<32x128xf32>
    %2 = arith.addf %0, %1 : vector<32x128xf32>
    %c0_3 = arith.constant 0 : index
    %c0_4 = arith.constant 0 : index
    %3 = vector.load %arg3[%c0_3, %c0_4] : memref<1x128xf32, #tpu.memory_space<vmem>>, vector<1x128xf32>
    %4 = vector.broadcast %3 : vector<1x128xf32> to vector<32x128xf32>
    %5 = arith.addf %2, %4 : vector<32x128xf32>
    %c0_5 = arith.constant 0 : index
    %c0_6 = arith.constant 0 : index
    %6 = vector.load %arg4[%c0_5, %c0_6] : memref<1x128xf32, #tpu.memory_space<vmem>>, vector<1x128xf32>
    %c0_7 = arith.constant 0 : index
    %c0_8 = arith.constant 0 : index
    %7 = vector.load %arg5[%c0_7, %c0_8] : memref<1x128xf32, #tpu.memory_space<vmem>>, vector<1x128xf32>
    %cst = arith.constant dense<0.000000e+00> : vector<32xf32>
    %8 = vector.multi_reduction <add>, %5, %cst [1] : vector<32x128xf32> to vector<32xf32>
    %9 = vector.shape_cast %8 : vector<32xf32> to vector<32x1xf32>
    %cst_9 = arith.constant 1.280000e+02 : f32
    %10 = vector.broadcast %cst_9 : f32 to vector<32x1xf32>
    %11 = arith.divf %9, %10 : vector<32x1xf32>
    %12 = vector.broadcast %11 : vector<32x1xf32> to vector<32x128xf32>
    %13 = arith.subf %5, %12 : vector<32x128xf32>
    %14 = arith.mulf %13, %13 : vector<32x128xf32>
    %cst_10 = arith.constant dense<0.000000e+00> : vector<32xf32>
    %15 = vector.multi_reduction <add>, %14, %cst_10 [1] : vector<32x128xf32> to vector<32xf32>
    %16 = vector.shape_cast %15 : vector<32xf32> to vector<32x1xf32>
    %cst_11 = arith.constant 1.280000e+02 : f32
    %17 = vector.broadcast %cst_11 : f32 to vector<32x1xf32>
    %18 = arith.divf %16, %17 : vector<32x1xf32>
    %19 = vector.broadcast %11 : vector<32x1xf32> to vector<32x128xf32>
    %20 = arith.subf %5, %19 : vector<32x128xf32>
    %cst_12 = arith.constant 9.99999974E-6 : f32
    %21 = vector.broadcast %cst_12 : f32 to vector<32x1xf32>
    %22 = arith.addf %18, %21 : vector<32x1xf32>
    %23 = math.rsqrt %22 : vector<32x1xf32>
    %24 = vector.broadcast %23 : vector<32x1xf32> to vector<32x128xf32>
    %25 = arith.mulf %20, %24 : vector<32x128xf32>
    %26 = vector.broadcast %6 : vector<1x128xf32> to vector<32x128xf32>
    %27 = arith.mulf %25, %26 : vector<32x128xf32>
    %28 = vector.broadcast %7 : vector<1x128xf32> to vector<32x128xf32>
    %29 = arith.addf %27, %28 : vector<32x128xf32>
    %30 = arith.truncf %29 : vector<32x128xf32> to vector<32x128xbf16>
    %c0_13 = arith.constant 0 : index
    %c0_14 = arith.constant 0 : index
    %31 = vector.load %arg6[%c0_13, %c0_14] : memref<32x128xbf16, #tpu.memory_space<vmem>>, vector<32x128xbf16>
    tpu.vector_store %arg6[%c0_13, %c0_14], %30 {strides = array<i32>} : memref<32x128xbf16, #tpu.memory_space<vmem>>, vector<32x128xbf16>,
    return
  }
  func.func @transform_0(%arg0: i32) -> (i32, i32) {
    %c0_i32 = arith.constant 0 : i32
    %c0_i32_0 = arith.constant 0 : i32
    return %arg0, %c0_i32 : i32, i32
  }
  func.func @transform_1(%arg0: i32) -> (i32, i32) {
    %c0_i32 = arith.constant 0 : i32
    %c0_i32_0 = arith.constant 0 : i32
    return %arg0, %c0_i32 : i32, i32
  }
  func.func @transform_2(%arg0: i32) -> (i32, i32) {
    %c0_i32 = arith.constant 0 : i32
    %c0_i32_0 = arith.constant 0 : i32
    %c0_i32_1 = arith.constant 0 : i32
    return %c0_i32, %c0_i32_0 : i32, i32
  }
  func.func @transform_3(%arg0: i32) -> (i32, i32) {
    %c0_i32 = arith.constant 0 : i32
    %c0_i32_0 = arith.constant 0 : i32
    %c0_i32_1 = arith.constant 0 : i32
    return %c0_i32, %c0_i32_0 : i32, i32
  }
  func.func @transform_4(%arg0: i32) -> (i32, i32) {
    %c0_i32 = arith.constant 0 : i32
    %c0_i32_0 = arith.constant 0 : i32
    %c0_i32_1 = arith.constant 0 : i32
    return %c0_i32, %c0_i32_0 : i32, i32
  }
  func.func @transform_5(%arg0: i32) -> (i32, i32) {
    %c0_i32 = arith.constant 0 : i32
    %c0_i32_0 = arith.constant 0 : i32
    return %arg0, %c0_i32 : i32, i32
  }
}

</mosaic_0001>

<bundles_post_ra>
// kernel: tpu_custom_call.1
= control target key start
LH: loop header
LB: loop body
LE: loop exit
PB: predicated region body
PF: predicated region fallthrough
CT: control target
= control target key end

     0   :  { %10 = vsyncpa [#allocation3], 0  ;;  %s518_s0 = inlined_call_operand.hbm [shape: f32[32,128], index: 0, kind: input, shape index: {}]   ;;  %s519_s1 = inlined_call_operand.hbm [shape: f32[32,128], index: 1, kind: input, shape index: {}]   ;;  %s520_s2 = inlined_call_operand.hbm [shape: f32[1,128], index: 2, kind: input, shape index: {}]   ;;  %s521_s3 = inlined_call_operand.hbm [shape: f32[1,128], index: 3, kind: input, shape index: {}]   ;;  %s522_s4 = inlined_call_operand.hbm [shape: f32[1,128], index: 4, kind: input, shape index: {}]   ;;  %s523_s5 = inlined_call_operand.hbm [shape: bf16[32,128], index: 5, kind: output, shape index: {}]  }
   0x1   :  { %11 = vsyncpa [#allocation6], 0 }
   0x2   :  { %12 = vsyncpa [#allocation9], 0 }
   0x3   :  { %13 = vsyncpa [#allocation4], 0  ;;  %s392_s18 = smov [#allocation5]   ;;  %s393_s20 = smov [#allocation8]  }
   0x4   :  { %s31_s19 = sshll.u32 %s392_s18, 4  ;;  %s54_s21 = sshll.u32 %s393_s20, 4  ;;  %s32_s19 = int_to_ptr.vmem [resolvable:$true] %s31_s19  ;;  %s432_s21 = int_to_ptr.vmem [resolvable:$true] %s54_s21 }
   0x5   :  { %s252_s24 = scalar_lea.hbm %s519_s1, 512 }
   0x6   :  { %p253_p0 = scmp.ne.s32.totalorder %s519_s1, %s252_s24  ;;  %p256_p1 = scmp.lt.u32.totalorder %s252_s24, %s519_s1 }
   0x8   :  { %p258_p2 = pnand %p256_p1, %p253_p0 }
   0xa   :  { %261 = shalt.err (!%p258_p2)
}
   0xb   :  { %s262_s29 = scalar_lea.vmem %s32_s19, 512  ;;  %p267_p4 = scmp.lt.s32.totalorder %s32_s19, %s32_s19 }
   0xc   :  { %p263_p3 = scmp.ne.s32.totalorder %s32_s19, %s262_s29  ;;  %p268_p5 = scmp.lt.s32.totalorder %s262_s29, %s262_s29 }
   0xe   :  { %p269_p6 = por %p268_p5, %p267_p4 }
  0x10   :  { %p270_p7 = pnand %p269_p6, %p263_p3 }
  0x12   :  { %273 = shalt.err (!%p270_p7)
}
  0x13   :  { %s394_s30 = smov 128   ;;  %s395_s6 = smov 8  }
  0x14   :  { %37 = dma.hbm_to_vmem [thread:$0]  %s519_s1, 512, %s32_s19, [#allocation6], %s394_s30, %s394_s30, %s395_s6  }
  0x15   :  { %s274_s11 = scalar_lea.hbm %s521_s3, 16 }
  0x16   :  { %p275_p8 = scmp.ne.s32.totalorder %s521_s3, %s274_s11  ;;  %p278_p9 = scmp.lt.u32.totalorder %s274_s11, %s521_s3 }
  0x18   :  { %p280_p10 = pnand %p278_p9, %p275_p8 }
  0x1a   :  { %283 = shalt.err (!%p280_p10)
}
  0x1b   :  { %s284_s16 = scalar_lea.vmem %s432_s21, 16  ;;  %s288_s1 = scalar_lea.vmem %s432_s21, 32 }
  0x1c   :  { %p285_p11 = scmp.ne.s32.totalorder %s432_s21, %s284_s16  ;;  %p289_p12 = scmp.lt.s32.totalorder %s432_s21, %s432_s21 }
  0x1d   :  { %p290_p13 = scmp.lt.s32.totalorder %s288_s1, %s284_s16 }
  0x1f   :  { %p291_p0 = por %p290_p13, %p289_p12 }
  0x21   :  { %p292_p1 = pnand %p291_p0, %p285_p11 }
  0x23   :  { %295 = shalt.err (!%p292_p1)
}
  0x24   :  { %57 = dma.hbm_to_vmem [thread:$0]  %s521_s3, 16, %s432_s21, [#allocation9]  }
  0x25   :  { %s396_s19 = smov [#allocation2]   ;;  %s397_s22 = smov [#allocation7]  }
  0x26   :  { %s19_s20 = sshll.u32 %s396_s19, 4  ;;  %s44_s23 = sshll.u32 %s397_s22, 4  ;;  %s20_s20 = int_to_ptr.vmem [resolvable:$true] %s19_s20  ;;  %s45_s23 = int_to_ptr.vmem [resolvable:$true] %s44_s23 }
  0x27   :  { %s296_s26 = scalar_lea.hbm %s518_s0, 512 }
  0x28   :  { %p297_p2 = scmp.ne.s32.totalorder %s518_s0, %s296_s26  ;;  %p300_p3 = scmp.lt.u32.totalorder %s296_s26, %s518_s0 }
  0x2a   :  { %p302_p4 = pnand %p300_p3, %p297_p2 }
  0x2c   :  { %305 = shalt.err (!%p302_p4)
}
  0x2d   :  { %s306_s3 = scalar_lea.vmem %s20_s20, 512  ;;  %p311_p6 = scmp.lt.s32.totalorder %s20_s20, %s20_s20 }
  0x2e   :  { %p307_p5 = scmp.ne.s32.totalorder %s20_s20, %s306_s3  ;;  %p312_p7 = scmp.lt.s32.totalorder %s306_s3, %s306_s3 }
  0x30   :  { %p313_p8 = por %p312_p7, %p311_p6 }
  0x32   :  { %p314_p9 = pnand %p313_p8, %p307_p5 }
  0x34   :  { %317 = shalt.err (!%p314_p9)
}
  0x35   :  { %25 = dma.hbm_to_vmem [thread:$0]  %s518_s0, 512, %s20_s20, [#allocation3], %s394_s30, %s394_s30, %s395_s6  }
  0x36   :  { %s318_s11 = scalar_lea.hbm %s520_s2, 16 }
  0x37   :  { %p319_p10 = scmp.ne.s32.totalorder %s520_s2, %s318_s11  ;;  %p322_p11 = scmp.lt.u32.totalorder %s318_s11, %s520_s2 }
  0x39   :  { %p324_p12 = pnand %p322_p11, %p319_p10 }
  0x3b   :  { %327 = shalt.err (!%p324_p12)
}
  0x3c   :  { %s328_s16 = scalar_lea.vmem %s45_s23, 16  ;;  %s332_s1 = scalar_lea.vmem %s45_s23, 32 }
  0x3d   :  { %p329_p13 = scmp.ne.s32.totalorder %s45_s23, %s328_s16  ;;  %p333_p0 = scmp.lt.s32.totalorder %s45_s23, %s45_s23 }
  0x3e   :  { %p334_p1 = scmp.lt.s32.totalorder %s332_s1, %s328_s16 }
  0x40   :  { %p335_p2 = por %p334_p1, %p333_p0 }
  0x42   :  { %p336_p3 = pnand %p335_p2, %p329_p13 }
  0x44   :  { %339 = shalt.err (!%p336_p3)
}
  0x45   :  { %47 = dma.hbm_to_vmem [thread:$0]  %s520_s2, 16, %s45_s23, [#allocation6]  }
  0x46   :  { %s398_s6 = smov [#allocation10]   ;;  %s340_s20 = scalar_lea.hbm %s522_s4, 16 }
  0x47   :  { %s64_s17 = sshll.u32 %s398_s6, 4  ;;  %p341_p4 = scmp.ne.s32.totalorder %s522_s4, %s340_s20  ;;  %s65_s17 = int_to_ptr.vmem [resolvable:$true] %s64_s17 }
  0x48   :  { %p344_p5 = scmp.lt.u32.totalorder %s340_s20, %s522_s4 }
  0x4a   :  { %p346_p6 = pnand %p344_p5, %p341_p4 }
  0x4c   :  { %349 = shalt.err (!%p346_p6)
}
  0x4d   :  { %s350_s27 = scalar_lea.vmem %s65_s17, 16  ;;  %s354_s2 = scalar_lea.vmem %s65_s17, 32 }
  0x4e   :  { %p351_p7 = scmp.ne.s32.totalorder %s65_s17, %s350_s27  ;;  %p355_p8 = scmp.lt.s32.totalorder %s65_s17, %s65_s17 }
  0x4f   :  { %p356_p9 = scmp.lt.s32.totalorder %s354_s2, %s350_s27 }
  0x51   :  { %p357_p10 = por %p356_p9, %p355_p8 }
  0x53   :  { %p358_p11 = pnand %p357_p10, %p351_p7 }
  0x55   :  { %361 = shalt.err (!%p358_p11)
}
  0x56   :  { %67 = dma.hbm_to_vmem [thread:$0]  %s522_s4, 16, %s65_s17, [#allocation9]  }
  0x57   :  { %384 = dma.done.wait [#allocation3], 512  }
  0x58   :  { %385 = vsyncadd [#allocation3], 4294966784 }
  0x59   :  { %386 = dma.done.wait [#allocation6], 528  }
  0x5a   :  { %387 = vsyncadd [#allocation6], 4294966768 }
  0x5b   :  { %388 = dma.done.wait [#allocation9], 32  }
  0x5c   :  { %389 = vsyncadd [#allocation9], 4294967264  ;;  %v83_v0 = vld [vmem:[#allocation2] sm:$0xff]  ;;  %v85_v4 = vld [vmem:[#allocation2 + $0x10] sm:$0xff]  ;;  %s399_s4 = smov [#allocation11]  }
  0x5d   :  { %v87_v1 = vld [vmem:[#allocation5] sm:$0xff]  ;;  %v89_v5 = vld [vmem:[#allocation5 + $0x10] sm:$0xff]  ;;  %v84_v6 = vld [vmem:[#allocation2 + $0x8] sm:$0xff]  ;;  %s198_s29 = sshll.u32 %s399_s4, 4  ;;  %s199_s29 = int_to_ptr.vmem [resolvable:$true] %s198_s29 }
  0x5e   :  { %v212_v2 = vld [vmem:[#allocation7] ss:$0 sm:$0xff]  ;;  %v91_v3 = vadd.f32 %v87_v1, %v83_v0  ;;  %v93_v7 = vadd.f32 %v89_v5, %v85_v4  ;;  %v88_v8 = vld [vmem:[#allocation5 + $0x8] sm:$0xff]  ;;  %v86_v9 = vld [vmem:[#allocation2 + $0x18] sm:$0xff]  ;;  %s362_s7 = scalar_lea.vmem %s199_s29, 256  ;;  %p367_p13 = scmp.lt.s32.totalorder %s199_s29, %s199_s29 }
  0x5f   :  { %v90_v10 = vld [vmem:[#allocation5 + $0x18] sm:$0xff]  ;;  %v92_v12 = vadd.f32 %v88_v8, %v84_v6  ;;  %v213_v47 = vld [vmem:[#allocation8] ss:$0 sm:$0xff]  ;;  %v214_v53 = vld [vmem:[#allocation10] ss:$0 sm:$0xff]  ;;  %p363_p12 = scmp.ne.s32.totalorder %s199_s29, %s362_s7  ;;  %p368_p0 = scmp.lt.s32.totalorder %s362_s7, %s362_s7 }
  0x60   :  { %v102_v11 = vadd.f32 %v212_v2, %v91_v3  ;;  %v94_v13 = vadd.f32 %v90_v10, %v86_v9  ;;  %v104_v14 = vadd.f32 %v212_v2, %v93_v7 }
  0x61   :  { %v103_v15 = vadd.f32 %v212_v2, %v92_v12  ;;  %p369_p1 = por %p368_p0, %p367_p13 }
  0x62   :  { %108 = vadd.xlane.f32.xlu0 %v102_v11  ;;  %112 = vadd.xlane.f32.xlu1 %v104_v14  ;;  %v105_v16 = vadd.f32 %v212_v2, %v94_v13 }
  0x63   :  { %p370_p2 = pnand %p369_p1, %p363_p12 }
  0x66   :  { %110 = vadd.xlane.f32.xlu0 %v103_v15  ;;  %114 = vadd.xlane.f32.xlu1 %v105_v16 }
  0xef   :  { %v109_v17 = vpop.xlane.xlu0 %108  ;;  %v113_v19 = vpop.xlane.xlu1 %112 }
  0xf0   :  { %v117_v18 = vmul.f32 0.0078125, %v109_v17  ;;  %v119_v20 = vmul.f32 0.0078125, %v113_v19 }
  0xf2   :  { %v121_v21 = vsub.f32 %v102_v11, %v117_v18  ;;  %v123_v22 = vsub.f32 %v104_v14, %v119_v20 }
  0xf3   :  { %v111_v23 = vpop.xlane.xlu0 %110  ;;  %v115_v26 = vpop.xlane.xlu1 %114 }
  0xf4   :  { %v118_v24 = vmul.f32 0.0078125, %v111_v23  ;;  %v125_v25 = vmul.f32 %v121_v21, %v121_v21  ;;  %v120_v27 = vmul.f32 0.0078125, %v115_v26  ;;  %v127_v29 = vmul.f32 %v123_v22, %v123_v22 }
  0xf6   :  { %v122_v28 = vsub.f32 %v103_v15, %v118_v24  ;;  %129 = vadd.xlane.f32.xlu0 %v125_v25  ;;  %v124_v30 = vsub.f32 %v105_v16, %v120_v27 }
  0xf8   :  { %v126_v31 = vmul.f32 %v122_v28, %v122_v28  ;;  %v128_v32 = vmul.f32 %v124_v30, %v124_v30 }
  0xfa   :  { %133 = vadd.xlane.f32.xlu0 %v127_v29  ;;  %131 = vadd.xlane.f32.xlu1 %v126_v31 }
  0xfe   :  { %135 = vadd.xlane.f32.xlu1 %v128_v32 }
 0x183   :  { %v130_v33 = vpop.xlane.xlu0 %129 }
 0x184   :  { %v137_v34 = vmul.f32 0.0078125, %v130_v33 }
 0x186   :  { %v141_v35 = vadd.f32 1e-05, %v137_v34 }
 0x187   :  { %v132_v36 = vpop.xlane.xlu1 %131  ;;  %v134_v37 = vpop.xlane.xlu0 %133 }
 0x188   :  { %244 = vrsqrt.f32 %v141_v35  ;;  %v138_v38 = vmul.f32 0.0078125, %v132_v36  ;;  %v139_v39 = vmul.f32 0.0078125, %v134_v37 }
 0x18a   :  { %v142_v40 = vadd.f32 1e-05, %v138_v38  ;;  %v143_v41 = vadd.f32 1e-05, %v139_v39 }
 0x18b   :  { %v136_v42 = vpop.xlane.xlu1 %135 }
 0x18c   :  { %246 = vrsqrt.f32 %v142_v40  ;;  %v140_v43 = vmul.f32 0.0078125, %v136_v42 }
 0x18d   :  { %248 = vrsqrt.f32 %v143_v41 }
 0x18e   :  { %v144_v44 = vadd.f32 1e-05, %v140_v43 }
 0x190   :  { %250 = vrsqrt.f32 %v144_v44 }
 0x192   :  { %v245_v45 = vpop.eup %244 }
 0x193   :  { %v149_v46 = vmul.f32 %v245_v45, %v121_v21 }
 0x195   :  { %v159_v51 = vmul.f32 %v213_v47, %v149_v46 }
 0x196   :  { %v247_v48 = vpop.eup %246 }
 0x197   :  { %v249_v49 = vpop.eup %248  ;;  %v150_v50 = vmul.f32 %v247_v48, %v122_v28  ;;  %v169_v58 = vadd.f32 %v214_v53, %v159_v51 }
 0x198   :  { %v151_v52 = vmul.f32 %v249_v49, %v123_v22 }
 0x199   :  { %v160_v54 = vmul.f32 %v213_v47, %v150_v50 }
 0x19a   :  { %v251_v55 = vpop.eup %250  ;;  %v161_v56 = vmul.f32 %v213_v47, %v151_v52 }
 0x19b   :  { %v152_v57 = vmul.f32 %v251_v55, %v124_v30  ;;  %v170_v59 = vadd.f32 %v214_v53, %v160_v54 }
 0x19c   :  { %v171_v62 = vadd.f32 %v214_v53, %v161_v56 }
 0x19d   :  { %v162_v60 = vmul.f32 %v213_v47, %v152_v57  ;;  %v226_v61 = vpack.c.bf16 %v170_v59, %v169_v58 }
 0x19f   :  { %v172_v63 = vadd.f32 %v214_v53, %v162_v60  ;;  %227 = vst [vmem:[#allocation11] sm:$0xff] %v226_v61  }
 0x1a1   :  { %v231_v0 = vpack.c.bf16 %v172_v63, %v171_v62 }
 0x1a3   :  { %233 = vst [vmem:[#allocation11 + $0x8] sm:$0xff] %v231_v0  }
 0x1a4   :  { %373 = shalt.err (!%p370_p2)
}
 0x1a5   :  { %s374_s8 = scalar_lea.hbm %s523_s5, 256 }
 0x1a6   :  { %p375_p3 = scmp.ne.s32.totalorder %s523_s5, %s374_s8  ;;  %p378_p4 = scmp.lt.u32.totalorder %s374_s8, %s523_s5 }
 0x1a8   :  { %p380_p5 = pnand %p378_p4, %p375_p3 }
 0x1aa   :  { %383 = shalt.err (!%p380_p5)
}
 0x1ab   :  { %s400_s13 = smov 64   ;;  %s401_s14 = smov 4  }
 0x1ac   :  { %204 = dma.vmem_to_hbm [thread:$0]  %s199_s29, 256, %s523_s5, [#allocation4], %s400_s13, %s400_s13, %s401_s14  }
 0x1ad   :  { %390 = dma.done.wait [#allocation4], 256  }
 0x1ae   :  { %391 = vsyncadd [#allocation4], 4294967040 }
 0x1af   :  { %208 = vsyncpa [#allocation3], 1 }
 0x1b0   :  { %209 = vsyncpa [#allocation6], 1 }
 0x1b1   :  { %210 = vsyncpa [#allocation9], 1 }
 0x1b2   :  { %211 = vsyncpa [#allocation4], 1 }

</bundles_post_ra>
